<compile_context>
chip_gen: v7x
topology: tpu7x:2x2x1
jax: 0.10.0
libtpu: 0.0.40
codegen_flags: <defaults>
</compile_context>

<pallas_src>
import functools

import jax
import jax.numpy as jnp
from jax import lax
from jax.experimental import pallas as pl
from jax.experimental.pallas import tpu as pltpu


def cnn_kernel(ids_ref, emb_ref, wconv_ref, bconv_ref, wlin_ref, blin_ref,
               out_ref, *, win, pad):
    # ids_ref:   (1, S, 1)   int32 token ids for this batch row
    # emb_ref:   (V, E)      embedding table
    # wconv_ref: (win*E, H)  Conv1d weight, tap-major rows (k*E + e, h)
    # bconv_ref: (1, H)      Conv1d bias
    # wlin_ref:  (H, P)      classifier weight, label dim zero-padded to P lanes
    # blin_ref:  (1, P)      classifier bias, padded labels filled with -1e30
    # out_ref:   (1, 1, P)   log-probabilities (padded label lanes)
    S = ids_ref.shape[1]
    V, E = emb_ref.shape
    l_out = S + 2 * pad - win + 1

    # --- fused embedding gather: one-hot(ids) @ table on the MXU -------------
    ids = ids_ref[0]                                           # (S, 1) int32
    vocab_iota = lax.broadcasted_iota(jnp.int32, (S, V), 1)
    onehot = (ids == vocab_iota).astype(jnp.float32)           # (S, V)
    x = jnp.dot(onehot, emb_ref[...],
                preferred_element_type=jnp.float32)            # (S, E)

    # --- Conv1d(padding=pad): zero-pad in time, concat the win shifted
    #     windows along channels, ONE (l_out, win*E) @ (win*E, H) MXU matmul. -
    zeros = jnp.zeros((pad, E), dtype=jnp.float32)
    x_pad = jnp.concatenate([zeros, x, zeros], axis=0)         # (S + 2*pad, E)
    xcat = jnp.concatenate([x_pad[k:k + l_out, :] for k in range(win)],
                           axis=1)                             # (l_out, win*E)
    acc = jnp.dot(xcat, wconv_ref[...],
                  preferred_element_type=jnp.float32) + bconv_ref[...]

    # --- ReLU + global max over time (the module's MaxPool reduces the length
    #     axis completely; the following View(batch, H) requires this). -------
    pooled = jnp.max(jnp.maximum(acc, 0.0), axis=0, keepdims=True)   # (1, H)

    # --- Linear classifier into the lane-dense padded label space ------------
    logits = jnp.dot(pooled, wlin_ref[...],
                     preferred_element_type=jnp.float32) + blin_ref[...]  # (1, P)

    # --- LogSoftmax (padded lanes carry a -1e30 bias -> exp underflows to 0) -
    m = jnp.max(logits, axis=-1, keepdims=True)
    z = logits - m
    lse = jnp.log(jnp.sum(jnp.exp(z), axis=-1, keepdims=True))
    out_ref[0] = z - lse


def cnn_forward(x_tokens, emb_table, w_conv_pt, b_conv, w_lin_pt, b_lin, *, win):
    """Forward pass of CNNModel (with_proj=False).

    x_tokens:  (S, B) int32 token ids (the module's leading Transpose()).
    emb_table: (V, E)           nn.Embedding.weight
    w_conv_pt: (H, E, win)      nn.Conv1d.weight (PyTorch layout)
    b_conv:    (H,)             nn.Conv1d.bias
    w_lin_pt:  (num_labels, H)  nn.Linear.weight (PyTorch layout)
    b_lin:     (num_labels,)    nn.Linear.bias
    returns:   (B, num_labels) log-probabilities
    """
    pad = 1  # mirrors the module's hardcoded Conv1d(..., padding=1)
    S, B = x_tokens.shape
    V, E = emb_table.shape
    H = w_conv_pt.shape[0]
    num_labels = w_lin_pt.shape[0]
    label_lanes = max(128, ((num_labels + 127) // 128) * 128)  # lane-dense labels

    # --- one-time parameter layout prep (no math) -----------------------------
    # Conv1d weight (H, E, win) -> tap-major (win, E, H) -> (win*E, H): the full
    # convolution becomes a single K = win*E matmul inside the kernel.
    w_conv = jnp.transpose(w_conv_pt, (2, 1, 0)).reshape(win * E, H)
    b_conv2 = b_conv.reshape(1, H).astype(jnp.float32)
    # Linear weight (num_labels, H) -> (H, label_lanes) zero-padded; padded bias
    # lanes get -1e30 so they contribute nothing to the softmax.
    w_lin = jnp.zeros((H, label_lanes), jnp.float32).at[:, :num_labels].set(w_lin_pt.T)
    b_lin_p = jnp.full((1, label_lanes), -1e30, jnp.float32).at[0, :num_labels].set(b_lin)

    # Tiny int glue: (S, B) -> (B, S, 1) so each grid step gets one sequence.
    ids = x_tokens.T.reshape(B, S, 1).astype(jnp.int32)

    kernel = functools.partial(cnn_kernel, win=win, pad=pad)

    out_padded = pl.pallas_call(
        kernel,
        out_shape=jax.ShapeDtypeStruct((B, 1, label_lanes), jnp.float32),
        grid=(B,),  # one batch row per step; sharded across TCs on v7x
        in_specs=[
            pl.BlockSpec((1, S, 1), lambda b: (b, 0, 0)),          # token ids
            pl.BlockSpec((V, E), lambda b: (0, 0)),                # emb table
            pl.BlockSpec((win * E, H), lambda b: (0, 0)),          # conv weight
            pl.BlockSpec((1, H), lambda b: (0, 0)),                # conv bias
            pl.BlockSpec((H, label_lanes), lambda b: (0, 0)),      # linear weight
            pl.BlockSpec((1, label_lanes), lambda b: (0, 0)),      # linear bias
        ],
        out_specs=pl.BlockSpec((1, 1, label_lanes), lambda b: (b, 0, 0)),
        compiler_params=pltpu.CompilerParams(
            dimension_semantics=("parallel",)),
    )(ids, emb_table.astype(jnp.float32), w_conv, b_conv2, w_lin, b_lin_p)

    return out_padded.reshape(B, label_lanes)[:, :num_labels]


def cnn_reference(x_tokens, emb_table, w_conv_pt, b_conv, w_lin_pt, b_lin, *, win):
    """Pure-JAX reference mirroring the PyTorch module (with_proj=False)."""
    pad = 1
    x_bt = x_tokens.T                                   # (B, S)
    emb = jnp.take(emb_table, x_bt, axis=0)             # (B, S, E)
    x = jnp.transpose(emb, (0, 2, 1))                   # (B, E, S)  NCW
    x = jnp.pad(x, ((0, 0), (0, 0), (pad, pad)))        # (B, E, S+2)
    l_out = x.shape[2] - win + 1
    H = w_conv_pt.shape[0]
    out = jnp.zeros((x.shape[0], H, l_out), jnp.float32)
    for k in range(win):
        out = out + jnp.einsum('bel,he->bhl', x[:, :, k:k + l_out], w_conv_pt[:, :, k])
    out = out + b_conv[None, :, None]
    out = jnp.maximum(out, 0.0)
    pooled = jnp.max(out, axis=2)                       # (B, H)
    logits = pooled @ w_lin_pt.T + b_lin
    return jax.nn.log_softmax(logits, axis=-1)


if __name__ == "__main__":
    # Small shapes consistent with the module's forward (with_proj=False).
    vocab_size = 50
    num_labels = 4
    emb_size = 32        # w_hid_size == emb_size when with_proj=False
    h_hid_size = 32
    win = 3
    batch_size = 2
    seq_len = 8

    key = jax.random.PRNGKey(0)
    k_tok, k_emb, k_wc, k_bc, k_wl, k_bl = jax.random.split(key, 6)

    # Parameters in their native PyTorch layouts (Embedding / Conv1d / Linear).
    emb_table = jax.random.normal(k_emb, (vocab_size, emb_size), jnp.float32) * 0.1
    w_conv_pt = jax.random.normal(k_wc, (h_hid_size, emb_size, win), jnp.float32) * 0.1
    b_conv = jax.random.normal(k_bc, (h_hid_size,), jnp.float32) * 0.1
    w_lin_pt = jax.random.normal(k_wl, (num_labels, h_hid_size), jnp.float32) * 0.1
    b_lin = jax.random.normal(k_bl, (num_labels,), jnp.float32) * 0.1

    # Input token ids, (seq, batch) as the module's leading Transpose() implies.
    x_tokens = jax.random.randint(k_tok, (seq_len, batch_size), 0, vocab_size,
                                  dtype=jnp.int32)

    out = cnn_forward(x_tokens, emb_table, w_conv_pt, b_conv, w_lin_pt, b_lin, win=win)
    out = jax.block_until_ready(out)

    ref = cnn_reference(x_tokens, emb_table, w_conv_pt, b_conv, w_lin_pt, b_lin, win=win)
    ref = jax.block_until_ready(ref)

    # Sanity: (batch, num_labels) log-probabilities, matching the JAX reference.
    assert out.shape == (batch_size, num_labels)
    assert jnp.allclose(jnp.sum(jnp.exp(out), axis=-1), 1.0, atol=1e-4)
    assert jnp.allclose(out, ref, atol=1e-3, rtol=1e-3)

    print("KERNEL_OK")
</pallas_src>

<mosaic_0001>
module attributes {stable_mosaic.version = 11 : i64} {
  func.func @cnn_kernel(%arg0: i32, %arg1: memref<1x8x1xi32, #tpu.memory_space<vmem>>, %arg2: memref<50x32xf32, #tpu.memory_space<vmem>>, %arg3: memref<96x32xf32, #tpu.memory_space<vmem>>, %arg4: memref<1x32xf32, #tpu.memory_space<vmem>>, %arg5: memref<32x128xf32, #tpu.memory_space<vmem>>, %arg6: memref<1x128xf32, #tpu.memory_space<vmem>>, %arg7: memref<1x1x128xf32, #tpu.memory_space<vmem>>) attributes {dimension_semantics = [#tpu.dimension_semantics<parallel>], iteration_bounds = array<i64: 2>, scalar_prefetch = 0 : i64, scratch_operands = 0 : i64, tpu.core_type = #tpu.core_type<tc>, window_params = [{transform_indices = @transform_0, window_bounds = array<i64: 1, 8, 1>}, {pipeline_mode = #tpu.pipeline_mode<synchronous>, transform_indices = @transform_1, window_bounds = array<i64: 50, 32>}, {pipeline_mode = #tpu.pipeline_mode<synchronous>, transform_indices = @transform_2, window_bounds = array<i64: 96, 32>}, {pipeline_mode = #tpu.pipeline_mode<synchronous>, transform_indices = @transform_3, window_bounds = array<i64: 1, 32>}, {pipeline_mode = #tpu.pipeline_mode<synchronous>, transform_indices = @transform_4, window_bounds = array<i64: 32, 128>}, {pipeline_mode = #tpu.pipeline_mode<synchronous>, transform_indices = @transform_5, window_bounds = array<i64: 1, 128>}, {transform_indices = @transform_6, window_bounds = array<i64: 1, 1, 128>}]} {
    %c0 = arith.constant 0 : index
    %c0_0 = arith.constant 0 : index
    %c0_1 = arith.constant 0 : index
    %0 = vector.load %arg1[%c0, %c0_0, %c0_1] : memref<1x8x1xi32, #tpu.memory_space<vmem>>, vector<1x8x1xi32>
    %1 = vector.shape_cast %0 : vector<1x8x1xi32> to vector<8x1xi32>
    %2 = tpu.iota {dimensions = array<i32: 1>} : vector<8x50xi32>
    %3 = vector.broadcast %1 : vector<8x1xi32> to vector<8x50xi32>
    %4 = arith.cmpi eq, %3, %2 : vector<8x50xi32>
    %5 = arith.extui %4 : vector<8x50xi1> to vector<8x50xi32>
    %6 = arith.sitofp %5 : vector<8x50xi32> to vector<8x50xf32>
    %c0_2 = arith.constant 0 : index
    %c0_3 = arith.constant 0 : index
    %7 = vector.load %arg2[%c0_2, %c0_3] : memref<50x32xf32, #tpu.memory_space<vmem>>, vector<50x32xf32>
    %cst = arith.constant dense<0.000000e+00> : vector<8x32xf32>
    %8 = tpu.matmul %6, %7, %cst {dimension_numbers = #tpu.dot_dimension_numbers<[1], [0], [0], [1], [0, 0, 1, 1], [], []>} : vector<8x50xf32>, vector<50x32xf32>, vector<8x32xf32> -> vector<8x32xf32>
    %cst_4 = arith.constant 0.000000e+00 : f32
    %9 = vector.broadcast %cst_4 : f32 to vector<1x32xf32>
    %10 = tpu.concatenate %9, %8, %9 in 0 : vector<1x32xf32>, vector<8x32xf32>, vector<1x32xf32> -> vector<10x32xf32>
    %11 = vector.extract_strided_slice %10 {offsets = [0, 0], sizes = [8, 32], strides = [1, 1]} : vector<10x32xf32> to vector<8x32xf32>
    %12 = vector.extract_strided_slice %10 {offsets = [1, 0], sizes = [8, 32], strides = [1, 1]} : vector<10x32xf32> to vector<8x32xf32>
    %13 = vector.extract_strided_slice %10 {offsets = [2, 0], sizes = [8, 32], strides = [1, 1]} : vector<10x32xf32> to vector<8x32xf32>
    %14 = tpu.concatenate %11, %12, %13 in 1 : vector<8x32xf32>, vector<8x32xf32>, vector<8x32xf32> -> vector<8x96xf32>
    %c0_5 = arith.constant 0 : index
    %c0_6 = arith.constant 0 : index
    %15 = vector.load %arg3[%c0_5, %c0_6] : memref<96x32xf32, #tpu.memory_space<vmem>>, vector<96x32xf32>
    %cst_7 = arith.constant dense<0.000000e+00> : vector<8x32xf32>
    %16 = tpu.matmul %14, %15, %cst_7 {dimension_numbers = #tpu.dot_dimension_numbers<[1], [0], [0], [1], [0, 0, 1, 1], [], []>} : vector<8x96xf32>, vector<96x32xf32>, vector<8x32xf32> -> vector<8x32xf32>
    %c0_8 = arith.constant 0 : index
    %c0_9 = arith.constant 0 : index
    %17 = vector.load %arg4[%c0_8, %c0_9] : memref<1x32xf32, #tpu.memory_space<vmem>>, vector<1x32xf32>
    %18 = vector.broadcast %17 : vector<1x32xf32> to vector<8x32xf32>
    %19 = arith.addf %16, %18 : vector<8x32xf32>
    %cst_10 = arith.constant 0.000000e+00 : f32
    %20 = vector.broadcast %cst_10 : f32 to vector<8x32xf32>
    %21 = arith.maximumf %19, %20 : vector<8x32xf32>
    %cst_11 = arith.constant dense<0xFF800000> : vector<32xf32>
    %22 = vector.multi_reduction <maximumf>, %21, %cst_11 [0] : vector<8x32xf32> to vector<32xf32>
    %23 = vector.shape_cast %22 : vector<32xf32> to vector<1x32xf32>
    %c0_12 = arith.constant 0 : index
    %c0_13 = arith.constant 0 : index
    %24 = vector.load %arg5[%c0_12, %c0_13] : memref<32x128xf32, #tpu.memory_space<vmem>>, vector<32x128xf32>
    %cst_14 = arith.constant dense<0.000000e+00> : vector<1x128xf32>
    %25 = tpu.matmul %23, %24, %cst_14 {dimension_numbers = #tpu.dot_dimension_numbers<[1], [0], [0], [1], [0, 0, 1, 1], [], []>} : vector<1x32xf32>, vector<32x128xf32>, vector<1x128xf32> -> vector<1x128xf32>
    %c0_15 = arith.constant 0 : index
    %c0_16 = arith.constant 0 : index
    %26 = vector.load %arg6[%c0_15, %c0_16] : memref<1x128xf32, #tpu.memory_space<vmem>>, vector<1x128xf32>
    %27 = arith.addf %25, %26 : vector<1x128xf32>
    %cst_17 = arith.constant dense<0xFF800000> : vector<1xf32>
    %28 = vector.multi_reduction <maximumf>, %27, %cst_17 [1] : vector<1x128xf32> to vector<1xf32>
    %29 = vector.shape_cast %28 : vector<1xf32> to vector<1x1xf32>
    %30 = vector.broadcast %29 : vector<1x1xf32> to vector<1x128xf32>
    %31 = arith.subf %27, %30 : vector<1x128xf32>
    %32 = math.exp %31 : vector<1x128xf32>
    %cst_18 = arith.constant dense<0.000000e+00> : vector<1xf32>
    %33 = vector.multi_reduction <add>, %32, %cst_18 [1] : vector<1x128xf32> to vector<1xf32>
    %34 = vector.shape_cast %33 : vector<1xf32> to vector<1x1xf32>
    %35 = math.log %34 : vector<1x1xf32>
    %36 = vector.broadcast %35 : vector<1x1xf32> to vector<1x128xf32>
    %37 = arith.subf %31, %36 : vector<1x128xf32>
    %c0_19 = arith.constant 0 : index
    %c0_20 = arith.constant 0 : index
    %c0_21 = arith.constant 0 : index
    %38 = vector.load %arg7[%c0_19, %c0_20, %c0_21] : memref<1x1x128xf32, #tpu.memory_space<vmem>>, vector<1x1x128xf32>
    %39 = vector.shape_cast %38 : vector<1x1x128xf32> to vector<1x128xf32>
    %40 = vector.shape_cast %37 : vector<1x128xf32> to vector<1x1x128xf32>
    tpu.vector_store %arg7[%c0_19, %c0_20, %c0_21], %40 {strides = array<i32>} : memref<1x1x128xf32, #tpu.memory_space<vmem>>, vector<1x1x128xf32>,
    return
  }
  func.func @transform_0(%arg0: i32) -> (i32, i32, i32) {
    %c0_i32 = arith.constant 0 : i32
    %c0_i32_0 = arith.constant 0 : i32
    %c0_i32_1 = arith.constant 0 : i32
    return %arg0, %c0_i32, %c0_i32_0 : i32, i32, i32
  }
  func.func @transform_1(%arg0: i32) -> (i32, i32) {
    %c0_i32 = arith.constant 0 : i32
    %c0_i32_0 = arith.constant 0 : i32
    %c0_i32_1 = arith.constant 0 : i32
    return %c0_i32, %c0_i32_0 : i32, i32
  }
  func.func @transform_2(%arg0: i32) -> (i32, i32) {
    %c0_i32 = arith.constant 0 : i32
    %c0_i32_0 = arith.constant 0 : i32
    %c0_i32_1 = arith.constant 0 : i32
    return %c0_i32, %c0_i32_0 : i32, i32
  }
  func.func @transform_3(%arg0: i32) -> (i32, i32) {
    %c0_i32 = arith.constant 0 : i32
    %c0_i32_0 = arith.constant 0 : i32
    %c0_i32_1 = arith.constant 0 : i32
    return %c0_i32, %c0_i32_0 : i32, i32
  }
  func.func @transform_4(%arg0: i32) -> (i32, i32) {
    %c0_i32 = arith.constant 0 : i32
    %c0_i32_0 = arith.constant 0 : i32
    %c0_i32_1 = arith.constant 0 : i32
    return %c0_i32, %c0_i32_0 : i32, i32
  }
  func.func @transform_5(%arg0: i32) -> (i32, i32) {
    %c0_i32 = arith.constant 0 : i32
    %c0_i32_0 = arith.constant 0 : i32
    %c0_i32_1 = arith.constant 0 : i32
    return %c0_i32, %c0_i32_0 : i32, i32
  }
  func.func @transform_6(%arg0: i32) -> (i32, i32, i32) {
    %c0_i32 = arith.constant 0 : i32
    %c0_i32_0 = arith.constant 0 : i32
    %c0_i32_1 = arith.constant 0 : i32
    return %arg0, %c0_i32, %c0_i32_0 : i32, i32, i32
  }
}

</mosaic_0001>

<bundles_post_ra>
// kernel: tpu_custom_call.1
= control target key start
LH: loop header
LB: loop body
LE: loop exit
PB: predicated region body
PF: predicated region fallthrough
CT: control target
= control target key end

     0   :  { %11 = vsyncpa [#allocation3], 0  ;;  %s1106_s0 = inlined_call_operand.vmem [shape: s32[2,8,1], index: 0, kind: input, shape index: {}]   ;;  %s1107_s1 = inlined_call_operand.vmem [shape: f32[50,32], index: 1, kind: input, shape index: {}]   ;;  %s1108_s2 = inlined_call_operand.vmem [shape: f32[96,32], index: 2, kind: input, shape index: {}]   ;;  %s1109_s3 = inlined_call_operand.vmem [shape: f32[1,32], index: 3, kind: input, shape index: {}]   ;;  %s1110_s4 = inlined_call_operand.vmem [shape: f32[32,128], index: 4, kind: input, shape index: {}]   ;;  %s1111_s5 = inlined_call_operand.vmem [shape: f32[1,128], index: 5, kind: input, shape index: {}]   ;;  %s1112_s6 = inlined_call_operand.hbm [shape: f32[2,1,128], index: 6, kind: output, shape index: {}]  }
   0x1   :  { %13 = vsyncpa [#allocation3 + $0x1], 0  ;;  %s910_s21 = smov 0   ;;  %s912_s22 = smov 0  }
   0x2   :  { %s914_s23 = smov 0   ;;  %s916_s24 = smov 0  }
   0x3 LB: > { %s931_s25 = sadd.s32 4294967295, %s866_s24   ;;  %s626_s26 = sadd.s32 4294967294, %s866_s24   ;;  %s866_s24 = sphi %s916_s24, %s1118_s24   ;;  %s862_s23 = sphi %s914_s23, %s1117_s23   ;;  %s858_s22 = sphi %s912_s22, %s1116_s22   ;;  %s854_s21 = sphi %s910_s21, %s1115_s21  }
   0x4   : > { %s935_s27 = sadd.s32 1, %s866_s24   ;;  %s157_s28 = sadd.s32 1, %s862_s23 }
   0x5   : > { %s154_s29 = ssub.s32 %s866_s24, %s935_s27  ;;  %p167_p0 = scmp.ne.s32.totalorder %s862_s23, %s858_s22 }
   0x6   : > { %p155_p1 = scmp.eq.s32.totalorder %s154_s29, 0  ;;  %p168_p2 = scmp.eq.s32.totalorder %s931_s25, 1 }
   0x7   : > { %p173_p3 = scmp.ne.s32.totalorder %s858_s22, %s854_s21  ;;  %p174_p4 = scmp.eq.s32.totalorder %s626_s26, 1 }
   0x8   : > { %s946_s30 = scalar_select %p155_p1, %s862_s23, %s157_s28  }
   0x9   : > { %p948_p5 = por %p168_p2, %p167_p0  ;;  %p952_p6 = por %p174_p4, %p173_p3 }
   0xa   : > { %p629_p7 = scmp.ge.s32.totalorder %s866_s24, 1  ;;  %p214_p8 = scmp.lt.s32.totalorder %s866_s24, 3 }
   0xc   : > { %p215_p9 = pnand %p629_p7, %p214_p8 }
   0xd   : > { %p242_p10 = scmp.lt.s32.totalorder (!%p215_p9), %s931_s25, 1  ;;  %v255_v0 = vld [vmem:[%s1107_s1] sm:$0xff] (!%p215_p9)  ;;  %v256_v1 = vld [vmem:[%s1107_s1 + $0x8] sm:$0xff] (!%p215_p9)  ;;  %v257_v2 = vld [vmem:[%s1107_s1 + $0x10] sm:$0xff] (!%p215_p9)  ;;  %v868_v3 = vmov (!%p215_p9), 0   ;;  %v869_v4 = vmov (!%p215_p9), 0.0|0.0   ;;  %v247_v14 = vlaneseq (!%p215_p9) }
   0xe   : > { %218 = sbr.rel (%p215_p9) target bundleno = 1264 (0x4f0), region = 44  ;;  %799 = vset.pattern.permute.xlu0 (!%p215_p9), %v868_v3  ;;  %721 = vmatprep.subr.bf16.mxu0 (!%p215_p9), %v869_v4  ;;  %v722_v5 = vpack.c.bf16 (!%p215_p9), %v256_v1, %v255_v0  ;;  %v258_v6 = vld [vmem:[%s1107_s1 + $0x18] sm:$0xff] (!%p215_p9)  ;;  %v259_v8 = vld [vmem:[%s1107_s1 + $0x20] sm:$0xff] (!%p215_p9)  ;;  %v260_v9 = vld [vmem:[%s1107_s1 + $0x28] sm:$0xff] (!%p215_p9)  ;;  %vm870_vm0 = vmmov (!%p215_p9), 0   ;;  %v871_v12 = vmov (!%p215_p9), 0.0  }
   0xf   : > { %730 = vmatprep.subr.bf16.mxu1 (!%p215_p9), %v869_v4  ;;  %v725_v7 = vpack.c.bf16 (!%p215_p9), %v258_v6, %v257_v2  ;;  %v728_v11 = vpack.c.bf16 (!%p215_p9), %v260_v9, %v259_v8  ;;  %680 = vmatprep.mubr.msk.f32.mxu0 (!%p215_p9), %vm870_vm0, %v871_v12  ;;  %v261_v13 = vld [vmem:[%s1107_s1 + $0x30] sm:$0x3] (!%p215_p9)  ;;  %vm266_vm1 = vcmask (!%p215_p9), 1041408   ;;  %v248_v15 = vand.u32 (!%p215_p9), 127, %v247_v14  ;;  %v366_v18 = vld [vmem:[%s1108_s2] sm:$0xff] (!%p215_p9)  ;;  %v367_v19 = vld [vmem:[%s1108_s2 + $0x8] sm:$0xff] (!%p215_p9) }
  0x10   : > { %723 = vmatpush3.bf16.msra.mxu0 (!%p215_p9), %v722_v5  ;;  %707 = vmatprep.mubr.msk.f32.mxu1 (!%p215_p9), %vm870_vm0, %v871_v12  ;;  %vm262_vm2 = vcmask (!%p215_p9), 408576   ;;  %v368_v20 = vld [vmem:[%s1108_s2 + $0x10] sm:$0xff] (!%p215_p9)  ;;  %v731_v21 = vpack.c.bf16 (!%p215_p9), %v367_v19, %v366_v18  ;;  %v369_v22 = vld [vmem:[%s1108_s2 + $0x18] sm:$0xff] (!%p215_p9)  ;;  %v370_v24 = vld [vmem:[%s1108_s2 + $0x20] sm:$0xff] (!%p215_p9)  ;;  %vm343_vm4 = vcmask (!%p215_p9), 1040384   ;;  %vm355_vm5 = vcmask (!%p215_p9), 1045504  }
  0x11   : > { %724 = vmatprep.subr.bf16.mxu0 (!%p215_p9), %v869_v4  ;;  %v734_v23 = vpack.c.bf16 (!%p215_p9), %v369_v22, %v368_v20  ;;  %v371_v25 = vld [vmem:[%s1108_s2 + $0x28] sm:$0xff] (!%p215_p9)  ;;  %v372_v27 = vld [vmem:[%s1108_s2 + $0x30] sm:$0xff] (!%p215_p9)  ;;  %v373_v28 = vld [vmem:[%s1108_s2 + $0x38] sm:$0xff] (!%p215_p9)  ;;  %vm348_vm6 = vcmask (!%p215_p9), 1046528   ;;  %s872_s28 = smov (!%p215_p9), 64   ;;  %s873_s29 = smov (!%p215_p9), 32  }
  0x12   : > { %732 = vmatpush3.bf16.msra.mxu1 (!%p215_p9), %v731_v21  ;;  %v737_v26 = vpack.c.bf16 (!%p215_p9), %v371_v25, %v370_v24  ;;  %v740_v29 = vpack.c.bf16 (!%p215_p9), %v373_v28, %v372_v27  ;;  %v374_v30 = vld [vmem:[%s1108_s2 + $0x40] sm:$0xff] (!%p215_p9)  ;;  %v375_v31 = vld [vmem:[%s1108_s2 + $0x48] sm:$0xff] (!%p215_p9)  ;;  %v376_v33 = vld [vmem:[%s1108_s2 + $0x50] sm:$0xff] (!%p215_p9)  ;;  %vm362_vm7 = vcmask (!%p215_p9), 261120   ;;  %vm364_vm8 = vcmask (!%p215_p9), 523264   ;;  %s240_s26 = sand.u32 (!%p215_p9), 1, %s858_s22  }
  0x13   : > { %733 = vmatprep.subr.bf16.mxu1 (!%p215_p9), %v869_v4  ;;  %v743_v32 = vpack.c.bf16 (!%p215_p9), %v375_v31, %v374_v30  ;;  %v377_v34 = vld [vmem:[%s1108_s2 + $0x58] sm:$0xff] (!%p215_p9)  ;;  %vm385_vm9 = vcmask (!%p215_p9), 785408   ;;  %v467_v51 = vld [vmem:[%s1110_s4] sm:$0xff] (!%p215_p9)  ;;  %v468_v52 = vld [vmem:[%s1110_s4 + $0x8] sm:$0xff] (!%p215_p9)  ;;  %s559_s13 = scalar_lea.sflag (!%p215_p9), [#allocation3], %s240_s26 }
  0x14   : > { %726 = vmatpush3.bf16.msra.mxu0 (!%p215_p9), %v725_v7  ;;  %v746_v35 = vpack.c.bf16 (!%p215_p9), %v377_v34, %v376_v33  ;;  %v749_v53 = vpack.c.bf16 (!%p215_p9), %v468_v52, %v467_v51  ;;  %v469_v54 = vld [vmem:[%s1110_s4 + $0x10] sm:$0xff] (!%p215_p9)  ;;  %v470_v55 = vld [vmem:[%s1110_s4 + $0x18] sm:$0xff] (!%p215_p9)  ;;  %v634_v57 = vld [vmem:[%s1109_s3] ss:$0 sm:$0xff] (!%p215_p9) }
  0x15   : > { %s243_s17 = scalar_select %p242_p10, %s931_s25, 1  ;;  %727 = vmatprep.subr.bf16.mxu0 %v869_v4  ;;  %v752_v56 = vpack.c.bf16 %v470_v55, %v469_v54  ;;  %v471_v5 = vld [vmem:[%s1111_s5] sm:$0x1] }
  0x16   : > { %735 = vmatpush3.bf16.msra.mxu1 %v734_v23 }
  0x17   : > { %s630_s18 = sshll.u32 %s243_s17, 3  ;;  %736 = vmatprep.subr.bf16.mxu1 %v869_v4 }
  0x18   : > { %s245_s10 = scalar_lea.vmem %s1106_s0, %s630_s18  ;;  %729 = vmatpush3.bf16.msra.mxu0 %v728_v11 }
  0x19   : > { %v246_v10 = vld [vmem:[%s245_s10] sm:$0xff]  ;;  %678 = vmatprep.subr.mxu0 %v871_v12 }
  0x1a   : > { %250 = vperm.xlu0 %799, %v246_v10   ;;  %738 = vmatpush3.bf16.msra.mxu1 %v737_v26 }
  0x1b   : > { %739 = vmatprep.subr.bf16.mxu1 %v869_v4 }
  0x1c   : > { %679 = vmatpush3.msk.msra.mxu0 %vm266_vm1, %v261_v13 }
  0x1d   : > { %748 = vmatprep.subr.bf16.mxu0 %v869_v4 }
  0x1e   : > { %741 = vmatpush3.bf16.msra.mxu1 %v740_v29 }
  0x1f   : > { %742 = vmatprep.subr.bf16.mxu1 %v869_v4 }
  0x22   : > { %744 = vmatpush3.bf16.msra.mxu1 %v743_v32 }
  0x23   : > { %745 = vmatprep.subr.bf16.mxu1 %v869_v4 }
  0x26   : > { %747 = vmatpush3.bf16.msra.mxu1 %v746_v35 }
  0x99   : > { %v251_v16 = vpop.permute.xlu0 %250 }
  0x9a   : > { %vm252_vm3 = vcmp.eq.s32.totalorder %v251_v16, %v248_v15 }
  0x9b   : > { %v631_v17 = vsel %vm252_vm3, 1.0, %v871_v12 }
  0x9c   : > { %681 = vmatmul.mubr.msk.f32.vlgmr.msra.gmra.mrb[0].mxu0 %vm262_vm2, %v631_v17 }
  0x9d   : > { %718 = vmatprep.mubr.msk.f32.mxu0 %vm870_vm0, %v871_v12  ;;  %750 = vmatpush3.bf16.msra.mxu0 %v749_v53 }
  0x9e   : > { %751 = vmatprep.subr.bf16.mxu0 %v869_v4 }
  0xa1   : > { %753 = vmatpush3.bf16.msra.mxu0 %v752_v56 }
 0x16f   : > { %v336_v36 = vpop.f32.mrb[0].mxu0 }
 0x170   : > { %v341_v37 = vrot.slane %v336_v36, 7  ;;  %v682_v38 = vpop.f32.mrb[1].mxu0 }
 0x172   : > { %v344_v39 = vsel %vm343_vm4, 0.0, %v341_v37  ;;  %v345_v40 = vsel %vm343_vm4, %v341_v37, 0.0 }
 0x173   : > { %v349_v41 = vrot.slane %v344_v39, 1  ;;  %v350_v42 = vrot.slane %v345_v40, 1  ;;  %v356_v43 = vrot.slane %v344_v39, 2  ;;  %v357_v44 = vrot.slane %v345_v40, 2 }
 0x175   : > { %v358_v45 = vsel %vm355_vm5, %v356_v43, %v357_v44  ;;  %v351_v46 = vsel %vm348_vm6, %v349_v41, %v350_v42 }
 0x176   : > { %359 = vrot.lane.b32.xlu1 %v358_v45, %s872_s28  ;;  %352 = vrot.lane.b32.xlu0 %v351_v46, %s873_s29  ;;  %s637_s28 = sshll.u32 %s931_s25, 4  ;;  %s241_s29 = scalar_lea.vmem [#allocation2], %s240_s26 }
 0x177   : > { %s571_s9 = sshll.u32 %s241_s29, 4  ;;  %s1064_s12 = scalar_lea.hbm %s1112_s6, %s637_s28  ;;  %s1066_s9 = int_to_ptr.vmem [resolvable:$true] %s571_s9 }
 0x178   : > { %s804_s14 = scalar_lea.vmem %s1066_s9, 16  ;;  %s874_s25 = smov [#allocation2]  }
 0x179   : > { %p805_p11 = scmp.ne.s32.totalorder %s1066_s9, %s804_s14  ;;  %s808_s15 = sshll.u32 %s874_s25, 4  ;;  %s809_s15 = int_to_ptr.vmem [resolvable:$false] %s808_s15 }
 0x17a   : > { %s810_s16 = scalar_lea.vmem %s809_s15, 32  ;;  %p811_p0 = scmp.lt.s32.totalorder %s1066_s9, %s809_s15 }
 0x17b   : > { %p806_p12 = pnand %p805_p11, %p948_p5  ;;  %p812_p1 = scmp.lt.s32.totalorder %s810_s16, %s804_s14 }
 0x17d   : > { %p807_p13 = pneg %p806_p12  ;;  %p813_p2 = por %p812_p1, %p811_p0 }
 0x17f   : > { %p814_p3 = pnand %p813_p2, %p807_p13 }
 0x1e8   : > { %v360_v47 = vpop.permute.xlu1 %359  ;;  %v353_v48 = vpop.permute.xlu0 %352 }
 0x1e9   : > { %v363_v49 = vsel %vm362_vm7, %v344_v39, %v353_v48 }
 0x1ea   : > { %v365_v50 = vsel %vm364_vm8, %v363_v49, %v360_v47 }
 0x1eb   : > { %708 = vmatmul.mubr.msk.f32.vlgmr.msra.gmra.mrb[0].mxu1 %vm385_vm9, %v365_v50 }
 0x2be   : > { %v455_v58 = vpop.f32.mrb[0].mxu1 }
 0x2bf   : > { %v456_v59 = vadd.f32 %v634_v57, %v455_v58  ;;  %v709_v60 = vpop.f32.mrb[1].mxu1 }
 0x2c1   : > { %v459_v61 = vmax.f32 %v456_v59, 0.0 }
 0x2c3   : > { %v460_v62 = vsel %vm362_vm7, %v459_v61, -inf }
 0x2c4   : > { %v461_v63 = vrot.slane %v460_v62, 4 }
 0x2c6   : > { %v462_v0 = vmax.f32 %v460_v62, %v461_v63 }
 0x2c8   : > { %v463_v1 = vrot.slane %v462_v0, 2 }
 0x2ca   : > { %v464_v2 = vmax.f32 %v462_v0, %v463_v1 }
 0x2cc   : > { %v465_v3 = vrot.slane %v464_v2, 1 }
 0x2ce   : > { %v466_v4 = vmax.f32 %v464_v2, %v465_v3 }
 0x2d0   : > { %719 = vmatmul.mubr.msk.f32.vlgmr.msra.gmra.mrb[2].mxu0 %vm362_vm7, %v466_v4 }
 0x3a3   : > { %v541_v6 = vpop.f32.mrb[2].mxu0 }
 0x3a4   : > { %v542_v7 = vadd.f32 %v541_v6, %v471_v5  ;;  %v720_v8 = vpop.f32.mrb[3].mxu0 }
 0x3a6   : > { %v545_v9 = vsel %vm343_vm4, %v542_v7, -inf }
 0x3a7   : > { %546 = vmax.xlane.f32.xlu1 %v545_v9 }
 0x434   : > { %v547_v10 = vpop.xlane.xlu1 %546 }
 0x435   : > { %v548_v11 = vsub.f32 %v542_v7, %v547_v10 }
 0x437   : > { %v549_v12 = vmul.f32 1.442695, %v548_v11 }
 0x439   : > { %800 = vpow2.f32 %v549_v12 }
 0x443   : > { %v801_v13 = vpop.eup %800 }
 0x444   : > { %v551_v14 = vsel %vm343_vm4, %v801_v13, 0.0 }
 0x445   : > { %552 = vadd.xlane.f32.xlu0 %v551_v14 }
 0x4d2   : > { %v553_v15 = vpop.xlane.xlu0 %552 }
 0x4d3   : > { %802 = vlog2.f32 %v553_v15 }
 0x4dd   : > { %v803_v16 = vpop.eup %802 }
 0x4de   : > { %v555_v17 = vmul.f32 0.6931472, %v803_v16 }
 0x4e0   : > { %v556_v18 = vsub.f32 %v548_v11, %v555_v17 }
 0x4e2   : > { %557 = vst [vmem:[%s241_s29] sm:$0x1] %v556_v18 }
 0x4e3   : > { %817 = shalt.err (!%p814_p3)
}
 0x4e4   : > { %s818_s17 = scalar_lea.hbm %s1064_s12, 16  ;;  %s822_s20 = scalar_lea.hbm %s1112_s6, 32 }
 0x4e5   : > { %p819_p4 = scmp.ne.s32.totalorder %s1064_s12, %s818_s17  ;;  %p823_p9 = scmp.lt.u32.totalorder %s1064_s12, %s1112_s6 }
 0x4e6   : > { %p824_p10 = scmp.lt.u32.totalorder %s822_s20, %s818_s17  ;;  %p826_p12 = scmp.lt.u32.totalorder %s818_s17, %s1064_s12 }
 0x4e7   : > { %p820_p7 = pnand %p819_p4, %p948_p5 }
 0x4e8   : > { %p825_p11 = por %p824_p10, %p823_p9 }
 0x4e9   : > { %p821_p8 = pneg %p820_p7 }
 0x4ea   : > { %p827_p13 = por %p826_p12, %p825_p11 }
 0x4ec   : > { %p828_p0 = pnand %p827_p13, %p821_p8 }
 0x4ee   : > { %831 = shalt.err (!%p828_p0)
}
 0x4ef   : > { %754 = dma.vmem_to_hbm [thread:$0]  (%p948_p5), %s1066_s9, 16, %s1064_s12, %s559_s13  }
 0x4f0 PF: > { %p760_p1 = scmp.ge.s32.totalorder %s866_s24, 2  ;;  %s583_s29 = sand.u32 1, %s854_s21  }
 0x4f1   : > { %s584_s10 = scalar_lea.sflag [#allocation3], %s583_s29 }
 0x4f2   : > { %p757_p2 = pnand %p760_p1, %p952_p6 }
 0x4f4   : > { %849 = dma.done.wait (!%p757_p2), %s584_s10, 16  }
 0x4f5   : > { %851 = vsyncadd (!%p757_p2), %s584_s10, 4294967280  ;;  %p16_p3 = scmp.ge.s32.totalorder %s935_s27, 4   ;;  %s1115_s21 = smov %s858_s22 }
 0x4f6   : > { %s1116_s22 = smov %s862_s23  ;;  %s1117_s23 = smov %s946_s30 }
 0x4f7   : > { %s1118_s24 = smov %s935_s27  ;;  %18 = sbr.rel (!%p16_p3) target bundleno = 3 (0x3), region = 79 }
 0x4fe   :  { %588 = vsyncpa [#allocation3], 1 }
 0x4ff   :  { %590 = vsyncpa [#allocation3 + $0x1], 1 }

</bundles_post_ra>
